<compile_context>
chip_gen: v7x
topology: tpu7x:2x2x1
jax: 0.10.0
libtpu: 0.0.40
codegen_flags: <defaults>
</compile_context>

<pallas_src>
import math
import functools

import jax
import jax.numpy as jnp
from jax import lax
from jax.experimental import pallas as pl
from jax.experimental.pallas import tpu as pltpu


def _round_up(x, m):
    return ((x + m - 1) // m) * m


def _pad_axis(x, axis, new_size):
    pad = new_size - x.shape[axis]
    if pad <= 0:
        return x
    widths = [(0, 0)] * x.ndim
    widths[axis] = (0, pad)
    return jnp.pad(x, widths)


def _flash_attn_kernel(*refs, scale, block_k, masked):
    """One (batch, q-tile, k-tile) grid step of online-softmax attention."""
    if masked:
        vl_ref, q_ref, k_ref, v_ref, o_ref, m_sc, l_sc, acc_sc = refs
    else:
        q_ref, k_ref, v_ref, o_ref, m_sc, l_sc, acc_sc = refs

    ki = pl.program_id(2)

    @pl.when(ki == 0)
    def _init():
        m_sc[...] = jnp.full_like(m_sc, -jnp.inf)
        l_sc[...] = jnp.zeros_like(l_sc)
        acc_sc[...] = jnp.zeros_like(acc_sc)

    # Fold 1/sqrt(d) into Q (Q*D multiplies instead of Q*K), keep operand dtype for the MXU.
    q = q_ref[0] * jnp.asarray(scale, dtype=q_ref.dtype)          # (tq, Dp)
    k = k_ref[0]                                                  # (tk, Dp)

    # QK^T without materializing k.T: contract dim 1 of both operands directly on the MXU.
    s = lax.dot_general(
        q, k,
        dimension_numbers=(((1,), (1,)), ((), ())),
        preferred_element_type=jnp.float32,
    )                                                             # (tq, tk) f32

    if masked:
        vl = vl_ref[0]                                            # (tq, 1) int32
        col = ki * block_k + lax.broadcasted_iota(jnp.int32, s.shape, 1)
        s = jnp.where(col < vl, s, jnp.float32(-1000000.0))       # "set" semantics, matches ref

    # Online softmax update (exact same result as full softmax once all k-tiles are seen).
    m_prev = m_sc[...]
    m_new = jnp.maximum(m_prev, jnp.max(s, axis=-1, keepdims=True))
    alpha = jnp.exp(m_prev - m_new)
    p = jnp.exp(s - m_new)                                        # (tq, tk) f32
    l_sc[...] = alpha * l_sc[...] + jnp.sum(p, axis=-1, keepdims=True)
    acc_sc[...] = alpha * acc_sc[...] + jnp.dot(
        p.astype(v_ref.dtype), v_ref[0], preferred_element_type=jnp.float32)
    m_sc[...] = m_new

    @pl.when(ki == pl.num_programs(2) - 1)
    def _finalize():
        # Normalize the (tq, Dv) output instead of the (tq, tk) weights; approx reciprocal
        # runs on the EUP slot, one Newton step restores full f32 accuracy.
        l = l_sc[...]
        inv = pl.reciprocal(l, approx=True)
        inv = inv * (2.0 - l * inv)
        o_ref[0] = (acc_sc[...] * inv).astype(o_ref.dtype)


@functools.partial(jax.jit, static_argnames=("block_q", "block_k", "vmem_limit_bytes"))
def dot_product_attention(queries, keys, values, valid_lens=None, *,
                          block_q=None, block_k=None, vmem_limit_bytes=None):
    """queries (B,Q,D), keys (B,K,D), values (B,K,Dv); valid_lens None, (B,) or (B,Q)."""
    B, Q, D = queries.shape
    _, K, Dv = values.shape
    scale = 1.0 / math.sqrt(D)
    out_dtype = queries.dtype

    # Lane-dense padding of hidden dims (multiples of 128) -> unmasked stores / full MXU lanes.
    Dp = _round_up(D, 128)
    Dvp = _round_up(Dv, 128)

    if block_q is None:
        block_q = min(256, _round_up(Q, 8))
    if block_k is None:
        block_k = min(512, _round_up(K, 128))
    Qp = _round_up(Q, block_q)
    Kp = _round_up(K, block_k)
    nq = Qp // block_q
    nk = Kp // block_k

    # Masking is needed either because the caller asked for it or because K was padded.
    masked = (valid_lens is not None) or (Kp != K)

    q = _pad_axis(_pad_axis(queries, 1, Qp), 2, Dp)
    k = _pad_axis(_pad_axis(keys, 1, Kp), 2, Dp)
    v = _pad_axis(_pad_axis(values, 1, Kp), 2, Dvp)

    inputs = []
    in_specs = []
    if masked:
        if valid_lens is None:
            vl = jnp.full((B, Q), K, dtype=jnp.int32)
        else:
            vl = valid_lens.astype(jnp.int32)
            if vl.ndim == 1:
                vl = jnp.broadcast_to(vl[:, None], (B, Q))        # per-batch -> per-query
            else:
                vl = vl.reshape(B, Q)                             # per-query (B, Q)
            vl = jnp.minimum(vl, K)                               # never unmask padded keys
        vl = _pad_axis(vl, 1, Qp)[..., None]                      # (B, Qp, 1)
        inputs.append(vl)
        in_specs.append(pl.BlockSpec((1, block_q, 1), lambda b, qi, ki: (b, qi, 0)))

    inputs += [q, k, v]
    in_specs += [
        pl.BlockSpec((1, block_q, Dp), lambda b, qi, ki: (b, qi, 0)),
        pl.BlockSpec((1, block_k, Dp), lambda b, qi, ki: (b, ki, 0)),
        pl.BlockSpec((1, block_k, Dvp), lambda b, qi, ki: (b, ki, 0)),
    ]

    kernel = functools.partial(
        _flash_attn_kernel, scale=scale, block_k=block_k, masked=masked)

    out = pl.pallas_call(
        kernel,
        out_shape=jax.ShapeDtypeStruct((B, Qp, Dvp), out_dtype),
        grid_spec=pltpu.PrefetchScalarGridSpec(
            num_scalar_prefetch=0,
            grid=(B, nq, nk),
            in_specs=in_specs,
            out_specs=pl.BlockSpec((1, block_q, Dvp), lambda b, qi, ki: (b, qi, 0)),
            scratch_shapes=[
                pltpu.VMEM((block_q, 1), jnp.float32),    # running max m
                pltpu.VMEM((block_q, 1), jnp.float32),    # running denom l
                pltpu.VMEM((block_q, Dvp), jnp.float32),  # f32 output accumulator
            ],
        ),
        compiler_params=pltpu.CompilerParams(
            dimension_semantics=("parallel", "parallel", "arbitrary"),
            vmem_limit_bytes=vmem_limit_bytes,
        ),
    )(*inputs)

    return out[:, :Q, :Dv]


def _reference(queries, keys, values, valid_lens):
    d = queries.shape[-1]
    scores = jnp.einsum("bqd,bkd->bqk", queries, keys) / math.sqrt(d)
    if valid_lens is not None:
        col = jnp.arange(scores.shape[-1])
        if valid_lens.ndim == 1:
            mask = col[None, None, :] < valid_lens[:, None, None]
        else:
            mask = col[None, None, :] < valid_lens[:, :, None]
        scores = jnp.where(mask, scores, -1000000.0)
    w = jax.nn.softmax(scores, axis=-1)
    return jnp.einsum("bqk,bkv->bqv", w, values)


if __name__ == "__main__":
    key = jax.random.PRNGKey(0)
    kq, kk, kv, kl = jax.random.split(key, 4)

    batch_size, num_queries, num_kv, num_hiddens, value_dim = 2, 8, 8, 32, 32

    queries = jax.random.normal(kq, (batch_size, num_queries, num_hiddens), dtype=jnp.float32)
    keys = jax.random.normal(kk, (batch_size, num_kv, num_hiddens), dtype=jnp.float32)
    values = jax.random.normal(kv, (batch_size, num_kv, value_dim), dtype=jnp.float32)
    valid_lens = jnp.array([3, 6], dtype=jnp.int32)

    # 1) per-batch (B,) valid_lens
    out = jax.block_until_ready(dot_product_attention(queries, keys, values, valid_lens))
    ref = _reference(queries, keys, values, valid_lens)
    assert out.shape == (batch_size, num_queries, value_dim)
    assert jnp.allclose(out, ref, atol=5e-5, rtol=5e-5), "mismatch vs reference (1-D valid_lens)"

    # 2) no mask
    out2 = jax.block_until_ready(dot_product_attention(queries, keys, values, None))
    ref2 = _reference(queries, keys, values, None)
    assert jnp.allclose(out2, ref2, atol=5e-5, rtol=5e-5), "mismatch vs reference (no mask)"

    # 3) per-query (B, Q) valid_lens
    vl2d = jax.random.randint(kl, (batch_size, num_queries), 1, num_kv + 1).astype(jnp.int32)
    out3 = jax.block_until_ready(dot_product_attention(queries, keys, values, vl2d))
    ref3 = _reference(queries, keys, values, vl2d)
    assert jnp.allclose(out3, ref3, atol=5e-5, rtol=5e-5), "mismatch vs reference (2-D valid_lens)"

    # 4) multi-tile path: several K tiles (online softmax across tiles) + padded/ragged Q
    kq2, kk2, kv2, kl2 = jax.random.split(jax.random.PRNGKey(0), 4)
    B2, Q2, K2, D2, Dv2 = 2, 160, 256, 64, 64
    q_big = jax.random.normal(kq2, (B2, Q2, D2), dtype=jnp.float32)
    k_big = jax.random.normal(kk2, (B2, K2, D2), dtype=jnp.float32)
    v_big = jax.random.normal(kv2, (B2, K2, Dv2), dtype=jnp.float32)
    vl_big = jax.random.randint(kl2, (B2,), 1, K2 + 1).astype(jnp.int32)
    out4 = jax.block_until_ready(
        dot_product_attention(q_big, k_big, v_big, vl_big, block_q=128, block_k=128))
    ref4 = _reference(q_big, k_big, v_big, vl_big)
    assert out4.shape == (B2, Q2, Dv2)
    assert jnp.allclose(out4, ref4, atol=1e-4, rtol=1e-4), "mismatch vs reference (tiled K/Q)"

    print("KERNEL_OK")
</pallas_src>

<mosaic_0001>
module attributes {stable_mosaic.version = 11 : i64} {
  func.func @_flash_attn_kernel(%arg0: i32, %arg1: i32, %arg2: i32, %arg3: memref<1x8x1xi32, #tpu.memory_space<vmem>>, %arg4: memref<1x8x128xf32, #tpu.memory_space<vmem>>, %arg5: memref<1x128x128xf32, #tpu.memory_space<vmem>>, %arg6: memref<1x128x128xf32, #tpu.memory_space<vmem>>, %arg7: memref<1x8x128xf32, #tpu.memory_space<vmem>>, %arg8: memref<8x1xf32, #tpu.memory_space<vmem>>, %arg9: memref<8x1xf32, #tpu.memory_space<vmem>>, %arg10: memref<8x128xf32, #tpu.memory_space<vmem>>) attributes {dimension_semantics = [#tpu.dimension_semantics<parallel>, #tpu.dimension_semantics<parallel>, #tpu.dimension_semantics<arbitrary>], iteration_bounds = array<i64: 2, 1, 1>, scalar_prefetch = 0 : i64, scratch_operands = 3 : i64, tpu.core_type = #tpu.core_type<tc>, window_params = [{transform_indices = @transform_0, window_bounds = array<i64: 1, 8, 1>}, {transform_indices = @transform_1, window_bounds = array<i64: 1, 8, 128>}, {transform_indices = @transform_2, window_bounds = array<i64: 1, 128, 128>}, {transform_indices = @transform_3, window_bounds = array<i64: 1, 128, 128>}, {transform_indices = @transform_4, window_bounds = array<i64: 1, 8, 128>}]} {
    %c0_i32 = arith.constant 0 : i32
    %0 = arith.cmpi eq, %arg2, %c0_i32 : i32
    %1 = arith.extui %0 : i1 to i32
    %c0_i32_0 = arith.constant 0 : i32
    %2 = arith.cmpi ne, %1, %c0_i32_0 : i32
    scf.if %2 {
      %cst_31 = arith.constant 0xFF800000 : f32
      %47 = vector.broadcast %cst_31 : f32 to vector<8x1xf32>
      %c0_32 = arith.constant 0 : index
      %c0_33 = arith.constant 0 : index
      %48 = vector.load %arg8[%c0_32, %c0_33] : memref<8x1xf32, #tpu.memory_space<vmem>>, vector<8x1xf32>
      tpu.vector_store %arg8[%c0_32, %c0_33], %47 {strides = array<i32>} : memref<8x1xf32, #tpu.memory_space<vmem>>, vector<8x1xf32>,
      %cst_34 = arith.constant 0.000000e+00 : f32
      %49 = vector.broadcast %cst_34 : f32 to vector<8x1xf32>
      %c0_35 = arith.constant 0 : index
      %c0_36 = arith.constant 0 : index
      %50 = vector.load %arg9[%c0_35, %c0_36] : memref<8x1xf32, #tpu.memory_space<vmem>>, vector<8x1xf32>
      tpu.vector_store %arg9[%c0_35, %c0_36], %49 {strides = array<i32>} : memref<8x1xf32, #tpu.memory_space<vmem>>, vector<8x1xf32>,
      %cst_37 = arith.constant 0.000000e+00 : f32
      %51 = vector.broadcast %cst_37 : f32 to vector<8x128xf32>
      %c0_38 = arith.constant 0 : index
      %c0_39 = arith.constant 0 : index
      %52 = vector.load %arg10[%c0_38, %c0_39] : memref<8x128xf32, #tpu.memory_space<vmem>>, vector<8x128xf32>
      tpu.vector_store %arg10[%c0_38, %c0_39], %51 {strides = array<i32>} : memref<8x128xf32, #tpu.memory_space<vmem>>, vector<8x128xf32>,
    } else {
    }
    %c0 = arith.constant 0 : index
    %c0_1 = arith.constant 0 : index
    %c0_2 = arith.constant 0 : index
    %3 = vector.load %arg4[%c0, %c0_1, %c0_2] : memref<1x8x128xf32, #tpu.memory_space<vmem>>, vector<1x8x128xf32>
    %4 = vector.shape_cast %3 : vector<1x8x128xf32> to vector<8x128xf32>
    %cst = arith.constant 0.176776692 : f32
    %5 = vector.broadcast %cst : f32 to vector<8x128xf32>
    %6 = arith.mulf %4, %5 : vector<8x128xf32>
    %c0_3 = arith.constant 0 : index
    %c0_4 = arith.constant 0 : index
    %c0_5 = arith.constant 0 : index
    %7 = vector.load %arg5[%c0_3, %c0_4, %c0_5] : memref<1x128x128xf32, #tpu.memory_space<vmem>>, vector<1x128x128xf32>
    %8 = vector.shape_cast %7 : vector<1x128x128xf32> to vector<128x128xf32>
    %cst_6 = arith.constant dense<0.000000e+00> : vector<8x128xf32>
    %9 = tpu.matmul %6, %8, %cst_6 {dimension_numbers = #tpu.dot_dimension_numbers<[1], [1], [0], [0], [0, 0, 1, 0], [], []>} : vector<8x128xf32>, vector<128x128xf32>, vector<8x128xf32> -> vector<8x128xf32>
    %c0_7 = arith.constant 0 : index
    %c0_8 = arith.constant 0 : index
    %c0_9 = arith.constant 0 : index
    %10 = vector.load %arg3[%c0_7, %c0_8, %c0_9] : memref<1x8x1xi32, #tpu.memory_space<vmem>>, vector<1x8x1xi32>
    %11 = vector.shape_cast %10 : vector<1x8x1xi32> to vector<8x1xi32>
    %c128_i32 = arith.constant 128 : i32
    %12 = arith.muli %arg2, %c128_i32 : i32
    %13 = tpu.iota {dimensions = array<i32: 1>} : vector<8x128xi32>
    %14 = vector.broadcast %12 : i32 to vector<8x128xi32>
    %15 = arith.addi %14, %13 : vector<8x128xi32>
    %16 = vector.broadcast %11 : vector<8x1xi32> to vector<8x128xi32>
    %17 = arith.cmpi slt, %15, %16 : vector<8x128xi32>
    %cst_10 = arith.constant -1.000000e+06 : f32
    %18 = vector.broadcast %cst_10 : f32 to vector<8x128xf32>
    %19 = arith.select %17, %9, %18 : vector<8x128xi1>, vector<8x128xf32>
    %c0_11 = arith.constant 0 : index
    %c0_12 = arith.constant 0 : index
    %20 = vector.load %arg8[%c0_11, %c0_12] : memref<8x1xf32, #tpu.memory_space<vmem>>, vector<8x1xf32>
    %cst_13 = arith.constant dense<0xFF800000> : vector<8xf32>
    %21 = vector.multi_reduction <maximumf>, %19, %cst_13 [1] : vector<8x128xf32> to vector<8xf32>
    %22 = vector.shape_cast %21 : vector<8xf32> to vector<8x1xf32>
    %23 = arith.maximumf %20, %22 : vector<8x1xf32>
    %24 = arith.subf %20, %23 : vector<8x1xf32>
    %25 = math.exp %24 : vector<8x1xf32>
    %26 = vector.broadcast %23 : vector<8x1xf32> to vector<8x128xf32>
    %27 = arith.subf %19, %26 : vector<8x128xf32>
    %28 = math.exp %27 : vector<8x128xf32>
    %c0_14 = arith.constant 0 : index
    %c0_15 = arith.constant 0 : index
    %29 = vector.load %arg9[%c0_14, %c0_15] : memref<8x1xf32, #tpu.memory_space<vmem>>, vector<8x1xf32>
    %30 = arith.mulf %25, %29 : vector<8x1xf32>
    %cst_16 = arith.constant dense<0.000000e+00> : vector<8xf32>
    %31 = vector.multi_reduction <add>, %28, %cst_16 [1] : vector<8x128xf32> to vector<8xf32>
    %32 = vector.shape_cast %31 : vector<8xf32> to vector<8x1xf32>
    %33 = arith.addf %30, %32 : vector<8x1xf32>
    %c0_17 = arith.constant 0 : index
    %c0_18 = arith.constant 0 : index
    %34 = vector.load %arg9[%c0_17, %c0_18] : memref<8x1xf32, #tpu.memory_space<vmem>>, vector<8x1xf32>
    tpu.vector_store %arg9[%c0_17, %c0_18], %33 {strides = array<i32>} : memref<8x1xf32, #tpu.memory_space<vmem>>, vector<8x1xf32>,
    %c0_19 = arith.constant 0 : index
    %c0_20 = arith.constant 0 : index
    %35 = vector.load %arg10[%c0_19, %c0_20] : memref<8x128xf32, #tpu.memory_space<vmem>>, vector<8x128xf32>
    %36 = vector.broadcast %25 : vector<8x1xf32> to vector<8x128xf32>
    %37 = arith.mulf %36, %35 : vector<8x128xf32>
    %c0_21 = arith.constant 0 : index
    %c0_22 = arith.constant 0 : index
    %c0_23 = arith.constant 0 : index
    %38 = vector.load %arg6[%c0_21, %c0_22, %c0_23] : memref<1x128x128xf32, #tpu.memory_space<vmem>>, vector<1x128x128xf32>
    %39 = vector.shape_cast %38 : vector<1x128x128xf32> to vector<128x128xf32>
    %cst_24 = arith.constant dense<0.000000e+00> : vector<8x128xf32>
    %40 = tpu.matmul %28, %39, %cst_24 {dimension_numbers = #tpu.dot_dimension_numbers<[1], [0], [0], [1], [0, 0, 1, 1], [], []>} : vector<8x128xf32>, vector<128x128xf32>, vector<8x128xf32> -> vector<8x128xf32>
    %41 = arith.addf %37, %40 : vector<8x128xf32>
    %c0_25 = arith.constant 0 : index
    %c0_26 = arith.constant 0 : index
    %42 = vector.load %arg10[%c0_25, %c0_26] : memref<8x128xf32, #tpu.memory_space<vmem>>, vector<8x128xf32>
    tpu.vector_store %arg10[%c0_25, %c0_26], %41 {strides = array<i32>} : memref<8x128xf32, #tpu.memory_space<vmem>>, vector<8x128xf32>,
    %c0_27 = arith.constant 0 : index
    %c0_28 = arith.constant 0 : index
    %43 = vector.load %arg8[%c0_27, %c0_28] : memref<8x1xf32, #tpu.memory_space<vmem>>, vector<8x1xf32>
    tpu.vector_store %arg8[%c0_27, %c0_28], %23 {strides = array<i32>} : memref<8x1xf32, #tpu.memory_space<vmem>>, vector<8x1xf32>,
    %c0_i32_29 = arith.constant 0 : i32
    %44 = arith.cmpi eq, %arg2, %c0_i32_29 : i32
    %45 = arith.extui %44 : i1 to i32
    %c0_i32_30 = arith.constant 0 : i32
    %46 = arith.cmpi ne, %45, %c0_i32_30 : i32
    scf.if %46 {
      %c0_31 = arith.constant 0 : index
      %c0_32 = arith.constant 0 : index
      %47 = vector.load %arg9[%c0_31, %c0_32] : memref<8x1xf32, #tpu.memory_space<vmem>>, vector<8x1xf32>
      %48 = tpu.reciprocal %47 {approx = true} : vector<8x1xf32> -> vector<8x1xf32>
      %49 = arith.mulf %47, %48 : vector<8x1xf32>
      %cst_33 = arith.constant 2.000000e+00 : f32
      %50 = vector.broadcast %cst_33 : f32 to vector<8x1xf32>
      %51 = arith.subf %50, %49 : vector<8x1xf32>
      %52 = arith.mulf %48, %51 : vector<8x1xf32>
      %c0_34 = arith.constant 0 : index
      %c0_35 = arith.constant 0 : index
      %53 = vector.load %arg10[%c0_34, %c0_35] : memref<8x128xf32, #tpu.memory_space<vmem>>, vector<8x128xf32>
      %54 = vector.broadcast %52 : vector<8x1xf32> to vector<8x128xf32>
      %55 = arith.mulf %53, %54 : vector<8x128xf32>
      %c0_36 = arith.constant 0 : index
      %c0_37 = arith.constant 0 : index
      %c0_38 = arith.constant 0 : index
      %56 = vector.load %arg7[%c0_36, %c0_37, %c0_38] : memref<1x8x128xf32, #tpu.memory_space<vmem>>, vector<1x8x128xf32>
      %57 = vector.shape_cast %56 : vector<1x8x128xf32> to vector<8x128xf32>
      %58 = vector.shape_cast %55 : vector<8x128xf32> to vector<1x8x128xf32>
      tpu.vector_store %arg7[%c0_36, %c0_37, %c0_38], %58 {strides = array<i32>} : memref<1x8x128xf32, #tpu.memory_space<vmem>>, vector<1x8x128xf32>,
    } else {
    }
    return
  }
  func.func @transform_0(%arg0: i32, %arg1: i32, %arg2: i32) -> (i32, i32, i32) {
    %c0_i32 = arith.constant 0 : i32
    %c0_i32_0 = arith.constant 0 : i32
    return %arg0, %arg1, %c0_i32 : i32, i32, i32
  }
  func.func @transform_1(%arg0: i32, %arg1: i32, %arg2: i32) -> (i32, i32, i32) {
    %c0_i32 = arith.constant 0 : i32
    %c0_i32_0 = arith.constant 0 : i32
    return %arg0, %arg1, %c0_i32 : i32, i32, i32
  }
  func.func @transform_2(%arg0: i32, %arg1: i32, %arg2: i32) -> (i32, i32, i32) {
    %c0_i32 = arith.constant 0 : i32
    %c0_i32_0 = arith.constant 0 : i32
    return %arg0, %arg2, %c0_i32 : i32, i32, i32
  }
  func.func @transform_3(%arg0: i32, %arg1: i32, %arg2: i32) -> (i32, i32, i32) {
    %c0_i32 = arith.constant 0 : i32
    %c0_i32_0 = arith.constant 0 : i32
    return %arg0, %arg2, %c0_i32 : i32, i32, i32
  }
  func.func @transform_4(%arg0: i32, %arg1: i32, %arg2: i32) -> (i32, i32, i32) {
    %c0_i32 = arith.constant 0 : i32
    %c0_i32_0 = arith.constant 0 : i32
    return %arg0, %arg1, %c0_i32 : i32, i32, i32
  }
}

</mosaic_0001>

<bundles_post_ra>
// kernel: dot_product_attention.1
= control target key start
LH: loop header
LB: loop body
LE: loop exit
PB: predicated region body
PF: predicated region fallthrough
CT: control target
= control target key end

     0   :  { %9 = vsyncpa [#allocation6], 0  ;;  %s1244_s0 = inlined_call_operand.vmem [shape: s32[2,8,1], index: 0, kind: input, shape index: {}]   ;;  %s1245_s1 = inlined_call_operand.vmem [shape: f32[2,8,128], index: 1, kind: input, shape index: {}]   ;;  %s1246_s2 = inlined_call_operand.vmem [shape: f32[2,128,128], index: 2, kind: input, shape index: {}]   ;;  %s1247_s3 = inlined_call_operand.vmem [shape: f32[2,128,128], index: 3, kind: input, shape index: {}]   ;;  %s1248_s4 = inlined_call_operand.hbm [shape: f32[2,8,128], index: 4, kind: output, shape index: {}]  }
   0x1   :  { %11 = vsyncpa [#allocation6 + $0x1], 0  ;;  %s1055_s15 = smov 0   ;;  %s1057_s16 = smov 0  }
   0x2   :  { %s1059_s17 = smov 0   ;;  %s1061_s18 = smov 0  }
   0x3   :  { %s1063_s19 = smov 0   ;;  %s1065_s20 = smov 0  }
   0x4 LB: > { %s706_s21 = sadd.s32 4294967295, %s1022_s20   ;;  %s707_s22 = sadd.s32 4294967294, %s1022_s20   ;;  %s1022_s20 = sphi %s1065_s20, %s17_s20   ;;  %s1018_s19 = sphi %s1063_s19, %s1255_s19   ;;  %s1014_s18 = sphi %s1061_s18, %s1254_s18   ;;  %s1010_s17 = sphi %s1059_s17, %s1253_s17   ;;  %s1006_s16 = sphi %s1057_s16, %s1252_s16   ;;  %s1002_s15 = sphi %s1055_s15, %s1251_s15  }
   0x5   : > { %s36_s23 = sadd.s32 1, %s1018_s19  ;;  %s157_s24 = sadd.s32 1, %s1010_s17 }
   0x6   : > { %p38_p0 = scmp.ge.s32.totalorder %s36_s23, 2  ;;  %p167_p1 = scmp.ne.s32.totalorder %s1010_s17, %s1006_s16 }
   0x7   : > { %p168_p2 = scmp.eq.s32.totalorder %s706_s21, 1  ;;  %p173_p3 = scmp.ne.s32.totalorder %s1006_s16, %s1002_s15 }
   0x8   : > { %s1257_s23 = smov (%p38_p0, %s36_s23), 0  ;;  %p174_p5 = scmp.eq.s32.totalorder %s707_s22, 1 }
   0x9   : > { %p1095_p4 = por %p168_p2, %p167_p1  ;;  %s152_s26 = ssub.s32 %s1018_s19, %s1257_s23 }
   0xa   : > { %p710_p6 = scmp.ge.s32.totalorder %s1022_s20, 1  ;;  %p155_p7 = scmp.eq.s32.totalorder %s152_s26, 0 }
   0xb   : > { %p1102_p8 = por %p174_p5, %p173_p3  ;;  %p238_p9 = scmp.lt.s32.totalorder %s1022_s20, 3 }
   0xc   : > { %s1108_s28 = scalar_select %p155_p7, %s1010_s17, %s157_s24  }
   0xd   : > { %p239_p10 = pnand %p710_p6, %p238_p9 }
   0xe   : > { %p291_p11 = scmp.lt.s32.totalorder (!%p239_p10), %s1014_s18, 1  ;;  %vm329_vm0 = vcmask (!%p239_p10), 7168   ;;  %v1024_v0 = vmov (!%p239_p10), 0.0|0.0   ;;  %v1025_v1 = vmov (!%p239_p10), 0.0   ;;  %vm1026_vm1 = vmmov (!%p239_p10), 0   ;;  %s288_s26 = sand.u32 (!%p239_p10), 1, %s1006_s16  }
   0xf   : > { %242 = sbr.rel (%p239_p10) target bundleno = 905 (0x389), region = 36  ;;  %828 = vmatprep.subr.bf16.mxu0 (!%p239_p10), %v1024_v0  ;;  %331 = vst.msk [vmem:[#allocation3] sm:$0xff] (!%p239_p10), %vm329_vm0, %v1025_v1  ;;  %790 = vmatprep.mubr.msk.f32.mxu0 (!%p239_p10), %vm1026_vm1, %v1025_v1  ;;  %v1027_v2 = vmov (!%p239_p10), 0   ;;  %v1028_v30 = vmov (!%p239_p10), -inf   ;;  %v423_v31 = vlaneseq (!%p239_p10)  ;;  %s567_s10 = scalar_lea.sflag (!%p239_p10), [#allocation6], %s288_s26 }
  0x10   : > { %936 = vset.pattern.permute.xlu0 (!%p239_p10), %v1027_v2  ;;  %937 = vset.pattern.permute.xlu1 (!%p239_p10), %v1027_v2  ;;  %330 = vst.msk [vmem:[#allocation2] sm:$0xff] (!%p239_p10), %vm329_vm0, %v1028_v30 }
  0x11   : > { %852 = vmatprep.subr.bf16.mxu1 (!%p239_p10), %v1024_v0  ;;  %825 = vmatprep.mubr.msk.f32.mxu1 (!%p239_p10), %vm1026_vm1, %v1025_v1  ;;  %v424_v32 = vand.u32 (!%p239_p10), 127, %v423_v31 }
  0x16   : > { %s1114_s29 = scalar_select %p291_p11, %s1014_s18, 1 }
  0x17   : > { %v432_v49 = vld [vmem:[#allocation2] sm:$0xff] }
  0x18   : > { %s722_s30 = sshll.u32 %s1114_s29, 7  ;;  %s712_s8 = sshll.u32 %s1114_s29, 3 }
  0x19   : > { %s1123_s7 = scalar_lea.vmem %s1246_s2, %s722_s30  ;;  %s297_s11 = scalar_lea.vmem %s1244_s0, %s712_s8 }
  0x1a   : > { %v335_v3 = vld [vmem:[%s1123_s7] sm:$0xff]  ;;  %v336_v4 = vld [vmem:[%s1123_s7 + $0x8] sm:$0xff]  ;;  %v337_v6 = vld [vmem:[%s1123_s7 + $0x10] sm:$0xff]  ;;  %s304_s14 = scalar_lea.vmem %s1245_s1, %s712_s8  ;;  %s1165_s24 = scalar_lea.vmem %s1247_s3, %s722_s30 }
  0x1b   : > { %v829_v5 = vpack.c.bf16 %v336_v4, %v335_v3  ;;  %v338_v7 = vld [vmem:[%s1123_s7 + $0x18] sm:$0xff]  ;;  %v421_v8 = vld [vmem:[%s297_s11] sm:$0xff]  ;;  %v340_v11 = vld [vmem:[%s1123_s7 + $0x28] sm:$0xff]  ;;  %s711_s29 = sshll.u32 %s288_s26, 3  ;;  %s719_s30 = sshll.u32 %s1014_s18, 7 }
  0x1c   : > { %428 = vperm.xlu0 %936, %v421_v8   ;;  %v832_v9 = vpack.c.bf16 %v338_v7, %v337_v6  ;;  %v339_v10 = vld [vmem:[%s1123_s7 + $0x20] sm:$0xff]  ;;  %v341_v13 = vld [vmem:[%s1123_s7 + $0x30] sm:$0xff]  ;;  %v342_v14 = vld [vmem:[%s1123_s7 + $0x38] sm:$0xff]  ;;  %s290_s5 = scalar_lea.vmem [#allocation5], %s711_s29  ;;  %s1197_s9 = scalar_lea.hbm %s1248_s4, %s719_s30 }
  0x1d   : > { %830 = vmatpush3.bf16.xpose.msra.mxu0 %v829_v5  ;;  %v835_v12 = vpack.c.bf16 %v340_v11, %v339_v10  ;;  %v838_v15 = vpack.c.bf16 %v342_v14, %v341_v13  ;;  %v343_v16 = vld [vmem:[%s1123_s7 + $0x40] sm:$0xff]  ;;  %v344_v17 = vld [vmem:[%s1123_s7 + $0x48] sm:$0xff]  ;;  %v345_v19 = vld [vmem:[%s1123_s7 + $0x50] sm:$0xff]  ;;  %s581_s6 = sshll.u32 %s290_s5, 4  ;;  %s1029_s18 = smov [#allocation5]   ;;  %s1199_s6 = int_to_ptr.vmem [resolvable:$true] %s581_s6 }
  0x1e   : > { %831 = vmatprep.subr.bf16.mxu0 %v1024_v0  ;;  %v841_v18 = vpack.c.bf16 %v344_v17, %v343_v16  ;;  %v346_v20 = vld [vmem:[%s1123_s7 + $0x58] sm:$0xff]  ;;  %v347_v22 = vld [vmem:[%s1123_s7 + $0x60] sm:$0xff]  ;;  %v348_v23 = vld [vmem:[%s1123_s7 + $0x68] sm:$0xff]  ;;  %s944_s11 = scalar_lea.vmem %s1199_s6, 128  ;;  %s948_s12 = sshll.u32 %s1029_s18, 4  ;;  %s949_s12 = int_to_ptr.vmem [resolvable:$false] %s948_s12 }
  0x1f   : > { %v844_v21 = vpack.c.bf16 %v346_v20, %v345_v19  ;;  %v847_v24 = vpack.c.bf16 %v348_v23, %v347_v22  ;;  %v349_v25 = vld [vmem:[%s1123_s7 + $0x70] sm:$0xff]  ;;  %v350_v26 = vld [vmem:[%s1123_s7 + $0x78] sm:$0xff]  ;;  %v333_v28 = vld [vmem:[%s304_s14] sm:$0xff]  ;;  %p945_p12 = scmp.ne.s32.totalorder %s1199_s6, %s944_s11  ;;  %s950_s13 = scalar_lea.vmem %s949_s12, 256 }
  0x20   : > { %v850_v27 = vpack.c.bf16 %v350_v26, %v349_v25  ;;  %v334_v29 = vmul.f32 0.17677669, %v333_v28  ;;  %v461_v37 = vld [vmem:[%s1165_s24] sm:$0xff]  ;;  %v462_v38 = vld [vmem:[%s1165_s24 + $0x8] sm:$0xff]  ;;  %v463_v39 = vld [vmem:[%s1165_s24 + $0x10] sm:$0xff]  ;;  %p951_p1 = scmp.lt.s32.totalorder %s1199_s6, %s949_s12  ;;  %p952_p2 = scmp.lt.s32.totalorder %s950_s13, %s944_s11 }
  0x21   : > { %v853_v40 = vpack.c.bf16 %v462_v38, %v461_v37  ;;  %v464_v41 = vld [vmem:[%s1165_s24 + $0x18] sm:$0xff]  ;;  %v465_v43 = vld [vmem:[%s1165_s24 + $0x20] sm:$0xff]  ;;  %v466_v44 = vld [vmem:[%s1165_s24 + $0x28] sm:$0xff]  ;;  %p946_p13 = pnand %p945_p12, %p1095_p4 }
  0x22   : > { %v856_v42 = vpack.c.bf16 %v464_v41, %v463_v39  ;;  %v859_v45 = vpack.c.bf16 %v466_v44, %v465_v43  ;;  %v467_v46 = vld [vmem:[%s1165_s24 + $0x30] sm:$0xff]  ;;  %v468_v47 = vld [vmem:[%s1165_s24 + $0x38] sm:$0xff]  ;;  %v469_v51 = vld [vmem:[%s1165_s24 + $0x40] sm:$0xff]  ;;  %p953_p3 = por %p952_p2, %p951_p1 }
  0x23   : > { %854 = vmatpush3.bf16.msra.mxu1 %v853_v40  ;;  %v862_v48 = vpack.c.bf16 %v468_v47, %v467_v46  ;;  %v470_v52 = vld [vmem:[%s1165_s24 + $0x48] sm:$0xff]  ;;  %v471_v56 = vld [vmem:[%s1165_s24 + $0x50] sm:$0xff]  ;;  %v472_v57 = vld [vmem:[%s1165_s24 + $0x58] sm:$0xff]  ;;  %p947_p0 = pneg %p946_p13 }
  0x24   : > { %855 = vmatprep.subr.bf16.mxu1 %v1024_v0  ;;  %v865_v54 = vpack.c.bf16 %v470_v52, %v469_v51  ;;  %v868_v59 = vpack.c.bf16 %v472_v57, %v471_v56  ;;  %v473_v60 = vld [vmem:[%s1165_s24 + $0x60] sm:$0xff]  ;;  %v474_v61 = vld [vmem:[%s1165_s24 + $0x68] sm:$0xff]  ;;  %v475_v63 = vld [vmem:[%s1165_s24 + $0x70] sm:$0xff] }
  0x25   : > { %833 = vmatpush3.bf16.xpose.msra.mxu0 %v832_v9  ;;  %v871_v62 = vpack.c.bf16 %v474_v61, %v473_v60  ;;  %v476_v1 = vld [vmem:[%s1165_s24 + $0x78] sm:$0xff]  ;;  %v447_v8 = vld [vmem:[#allocation3] sm:$0xff]  ;;  %p954_p5 = pnand %p953_p3, %p947_p0 }
  0x26   : > { %834 = vmatprep.subr.bf16.mxu0 %v1024_v0  ;;  %v874_v2 = vpack.c.bf16 %v476_v1, %v475_v63 }
  0x27   : > { %857 = vmatpush3.bf16.msra.mxu1 %v856_v42 }
  0x28   : > { %858 = vmatprep.subr.bf16.mxu1 %v1024_v0 }
  0x2b   : > { %860 = vmatpush3.bf16.msra.mxu1 %v859_v45 }
  0x2c   : > { %861 = vmatprep.subr.bf16.mxu1 %v1024_v0 }
  0x2d   : > { %836 = vmatpush3.bf16.xpose.msra.mxu0 %v835_v12 }
  0x2e   : > { %837 = vmatprep.subr.bf16.mxu0 %v1024_v0 }
  0x2f   : > { %863 = vmatpush3.bf16.msra.mxu1 %v862_v48 }
  0x30   : > { %864 = vmatprep.subr.bf16.mxu1 %v1024_v0 }
  0x33   : > { %866 = vmatpush3.bf16.msra.mxu1 %v865_v54 }
  0x34   : > { %867 = vmatprep.subr.bf16.mxu1 %v1024_v0 }
  0x35   : > { %839 = vmatpush3.bf16.xpose.msra.mxu0 %v838_v15 }
  0x36   : > { %840 = vmatprep.subr.bf16.mxu0 %v1024_v0 }
  0x37   : > { %869 = vmatpush3.bf16.msra.mxu1 %v868_v59 }
  0x38   : > { %870 = vmatprep.subr.bf16.mxu1 %v1024_v0 }
  0x3b   : > { %872 = vmatpush3.bf16.msra.mxu1 %v871_v62 }
  0x3c   : > { %873 = vmatprep.subr.bf16.mxu1 %v1024_v0 }
  0x3d   : > { %842 = vmatpush3.bf16.xpose.msra.mxu0 %v841_v18 }
  0x3e   : > { %843 = vmatprep.subr.bf16.mxu0 %v1024_v0 }
  0x3f   : > { %875 = vmatpush3.bf16.msra.mxu1 %v874_v2 }
  0x45   : > { %845 = vmatpush3.bf16.xpose.msra.mxu0 %v844_v21 }
  0x46   : > { %846 = vmatprep.subr.bf16.mxu0 %v1024_v0 }
  0x4d   : > { %848 = vmatpush3.bf16.xpose.msra.mxu0 %v847_v24 }
  0x4e   : > { %849 = vmatprep.subr.bf16.mxu0 %v1024_v0 }
  0x55   : > { %851 = vmatpush3.bf16.xpose.msra.mxu0 %v850_v27 }
  0x5c   : > { %791 = vmatmul.mubr.f32.vlgmr.msra.gmra.mrb[0].mxu0 %v334_v29 }
  0x9b   : > { %v429_v33 = vpop.permute.xlu0 %428 }
  0x9c   : > { %vm430_vm2 = vcmp.lt.s32.totalorder %v424_v32, %v429_v33 }
 0x12f   : > { %v417_v34 = vpop.f32.mrb[0].mxu0 }
 0x130   : > { %v792_v35 = vpop.f32.mrb[1].mxu0  ;;  %v431_v36 = vsel %vm430_vm2, %v417_v34, -1000000.0 }
 0x131   : > { %433 = vmax.xlane.f32.xlu0 %v431_v36 }
 0x1be   : > { %v434_v50 = vpop.xlane.xlu0 %433 }
 0x1bf   : > { %v435_v53 = vmax.f32 %v432_v49, %v434_v50 }
 0x1c1   : > { %v436_v55 = vsub.f32 %v432_v49, %v435_v53  ;;  %549 = vst.msk [vmem:[#allocation2] sm:$0xff] %vm329_vm0, %v435_v53  ;;  %441 = vperm.xlu1 %937, %v435_v53  }
 0x1c3   : > { %v437_v58 = vmul.f32 1.442695, %v436_v55 }
 0x1c5   : > { %938 = vpow2.f32 %v437_v58 }
 0x1cf   : > { %v939_v3 = vpop.eup %938 }
 0x1d0   : > { %457 = vperm.xlu0 %936, %v939_v3   ;;  %v448_v9 = vmul.f32 %v939_v3, %v447_v8 }
 0x240   : > { %v442_v4 = vpop.permute.xlu1 %441 }
 0x241   : > { %v444_v5 = vsub.f32 %v431_v36, %v442_v4 }
 0x243   : > { %v445_v6 = vmul.f32 1.442695, %v444_v5 }
 0x245   : > { %940 = vpow2.f32 %v445_v6 }
 0x24f   : > { %v941_v7 = vpop.eup %940  ;;  %v458_v18 = vpop.permute.xlu0 %457 }
 0x250   : > { %449 = vadd.xlane.f32.xlu1 %v941_v7  ;;  %826 = vmatmul.mubr.f32.vlgmr.msra.gmra.mrb[0].mxu1 %v941_v7  ;;  %v460_v19 = vmul.f32 0.0, %v458_v18 }
 0x2dd   : > { %v450_v10 = vpop.xlane.xlu1 %449 }
 0x2de   : > { %v451_v11 = vadd.f32 %v450_v10, %v448_v9 }
 0x2e0   : > { %453 = vst.msk [vmem:[#allocation3] sm:$0xff] %vm329_vm0, %v451_v11 }
 0x2e7   : > { %v553_v12 = vld [vmem:[#allocation3] sm:$0xff] }
 0x2e8   : > { %942 = vrcp.f32 %v553_v12 }
 0x2f2   : > { %v943_v0 = vpop.eup %942 }
 0x2f3   : > { %v555_v13 = vmul.f32 %v943_v0, %v553_v12 }
 0x2f5   : > { %v556_v14 = vsub.f32 2.0, %v555_v13 }
 0x2f7   : > { %v557_v15 = vmul.f32 %v943_v0, %v556_v14 }
 0x2f9   : > { %561 = vperm.xlu1 %937, %v557_v15  }
 0x323   : > { %v543_v16 = vpop.f32.mrb[0].mxu1 }
 0x324   : > { %v827_v17 = vpop.f32.mrb[1].mxu1  ;;  %v547_v20 = vadd.f32 %v543_v16, %v460_v19 }
 0x378   : > { %v562_v21 = vpop.permute.xlu1 %561 }
 0x379   : > { %v564_v22 = vmul.f32 %v562_v21, %v547_v20 }
 0x37b   : > { %565 = vst [vmem:[%s290_s5] sm:$0xff] %v564_v22 }
 0x37c   : > { %957 = shalt.err (!%p954_p5)
}
 0x37d   : > { %s958_s14 = scalar_lea.hbm %s1197_s9, 128  ;;  %s962_s24 = scalar_lea.hbm %s1248_s4, 256 }
 0x37e   : > { %p959_p6 = scmp.ne.s32.totalorder %s1197_s9, %s958_s14  ;;  %p963_p10 = scmp.lt.u32.totalorder %s1197_s9, %s1248_s4 }
 0x37f   : > { %p964_p11 = scmp.lt.u32.totalorder %s962_s24, %s958_s14  ;;  %p966_p13 = scmp.lt.u32.totalorder %s958_s14, %s1197_s9 }
 0x380   : > { %p960_p7 = pnand %p959_p6, %p1095_p4 }
 0x381   : > { %p965_p12 = por %p964_p11, %p963_p10 }
 0x382   : > { %p961_p9 = pneg %p960_p7 }
 0x383   : > { %p967_p0 = por %p966_p13, %p965_p12 }
 0x385   : > { %p968_p1 = pnand %p967_p0, %p961_p9 }
 0x387   : > { %971 = shalt.err (!%p968_p1)
}
 0x388   : > { %876 = dma.vmem_to_hbm [thread:$0]  (%p1095_p4), %s1199_s6, 128, %s1197_s9, %s567_s10  }
 0x389 PF: > { %p882_p2 = scmp.ge.s32.totalorder %s1022_s20, 2  ;;  %s593_s30 = sand.u32 1, %s1002_s15  }
 0x38a   : > { %s594_s5 = scalar_lea.sflag [#allocation6], %s593_s30 }
 0x38b   : > { %p879_p3 = pnand %p882_p2, %p1102_p8 }
 0x38d   : > { %997 = dma.done.wait (!%p879_p3), %s594_s5, 128  }
 0x38e   : > { %999 = vsyncadd (!%p879_p3), %s594_s5, 4294967168  ;;  %s17_s20 = sadd.s32 1, %s1022_s20   ;;  %s1251_s15 = smov %s1006_s16 }
 0x38f   : > { %p14_p5 = scmp.ge.s32.totalorder %s17_s20, 4   ;;  %s1252_s16 = smov %s1010_s17 }
 0x390   : > { %s1253_s17 = smov %s1108_s28  ;;  %s1254_s18 = smov %s1018_s19 }
 0x391   : > { %s1255_s19 = smov %s1257_s23  ;;  %16 = sbr.rel (!%p14_p5) target bundleno = 4 (0x4), region = 88 }
 0x398   :  { %599 = vsyncpa [#allocation6], 1 }
 0x399   :  { %601 = vsyncpa [#allocation6 + $0x1], 1 }

</bundles_post_ra>
